<compile_context>
chip_gen: v6e
topology: v6e:2x2x1
jax: 0.10.0
libtpu: 0.0.40
codegen_flags: <defaults>
</compile_context>

<pallas_src>
import jax
import jax.numpy as jnp
from jax.experimental import pallas as pl
from jax.experimental.pallas import tpu as pltpu


def _chomp_copy_kernel(x_ref, o_ref):
    # x_ref: (TM, TLx) tile, o_ref: (TM, TLo) tile with TLo <= TLx.
    # Tiled path: TLx == TLo -> plain full-tile copy (no masked slice).
    # Small-L fallback: TLx == L, TLo == L_out -> static tail-drop slice.
    o_ref[...] = x_ref[:, : o_ref.shape[-1]]


def chomp1d(x: jax.Array, chomp_size: int) -> jax.Array:
    """Pallas equivalent of Chomp1d(chomp_size)(x): x[:, :, :-chomp_size]."""
    assert x.ndim == 3, "expected (N, C, L)"
    n, c, l = x.shape
    # PyTorch's x[:, :, :-0] degenerates to an empty tensor; require > 0.
    assert 0 < chomp_size < l, "chomp_size must be in (0, L)"
    l_out = l - chomp_size
    rows = n * c

    # Collapse (N, C) onto the sublane axis (contiguous, free reshape).
    x2 = x.reshape(rows, l)

    itemsize = jnp.dtype(x.dtype).itemsize

    # Row tile: a multiple of 8 sublanes whenever rows >= 8 (partial last
    # block is clipped and remains legal); full extent for tiny row counts.
    if rows < 8:
        tm = rows
    else:
        tm = min(512, (rows // 8) * 8)

    cost = pl.CostEstimate(
        flops=0,
        transcendentals=0,
        bytes_accessed=2 * rows * l_out * itemsize,
    )

    if l_out >= 128:
        # Tile only [0, L_out): the chomped tail is never read from HBM.
        # TL is a 128-multiple <= L_out, so all but the final (clipped) tile
        # use unmasked lane-dense stores; any over-read on the final input
        # tile stays within / is clipped to the input's L extent.
        tl = min(1024, (l_out // 128) * 128)
        # Keep each tile <= ~4 MiB so double-buffered in+out fits easily
        # under the scoped-VMEM defaults on v5e/v6e/v7x.
        while tm * tl * itemsize > (4 << 20) and tl > 128:
            tl //= 2
        grid = (pl.cdiv(rows, tm), pl.cdiv(l_out, tl))
        in_spec = pl.BlockSpec((tm, tl), lambda i, j: (i, j))
        out_spec = pl.BlockSpec((tm, tl), lambda i, j: (i, j))
    else:
        # Small-L fallback: full-extent length blocks (always legal).
        grid = (pl.cdiv(rows, tm), 1)
        in_spec = pl.BlockSpec((tm, l), lambda i, j: (i, 0))
        out_spec = pl.BlockSpec((tm, l_out), lambda i, j: (i, 0))

    y2 = pl.pallas_call(
        _chomp_copy_kernel,
        out_shape=jax.ShapeDtypeStruct((rows, l_out), x.dtype),
        grid_spec=pltpu.PrefetchScalarGridSpec(
            num_scalar_prefetch=0,
            grid=grid,
            in_specs=[in_spec],
            out_specs=out_spec,
        ),
        compiler_params=pltpu.CompilerParams(
            dimension_semantics=("parallel", "parallel"),
        ),
        cost_estimate=cost,
    )(x2)

    return y2.reshape(n, c, l_out)


if __name__ == "__main__":
    key = jax.random.PRNGKey(0)
    k1, k2, k3 = jax.random.split(key, 3)

    # Test 1: small shapes consistent with the module (fallback path).
    N, C, L = 2, 4, 16
    chomp_size = 3  # (kernel_size - 1) * dilation in a TCN
    x = jax.random.normal(k1, (N, C, L), dtype=jnp.float32)
    y = jax.block_until_ready(chomp1d(x, chomp_size))
    y_ref = x[:, :, :-chomp_size]
    assert y.shape == (N, C, L - chomp_size), y.shape
    assert jnp.array_equal(y, y_ref), "mismatch vs reference slice (small path)"

    # Test 2: exercises the 128-aligned tiled path incl. a partial last tile.
    N2, C2, L2, chomp2 = 2, 4, 272, 72  # L_out = 200
    x2 = jax.random.normal(k2, (N2, C2, L2), dtype=jnp.float32)
    y2 = jax.block_until_ready(chomp1d(x2, chomp2))
    y2_ref = x2[:, :, :-chomp2]
    assert y2.shape == (N2, C2, L2 - chomp2), y2.shape
    assert jnp.array_equal(y2, y2_ref), "mismatch vs reference slice (tiled path)"

    # Test 3: rows not a multiple of 8 (clipped 8-multiple row tile path).
    N3, C3, L3, chomp3 = 3, 3, 160, 20  # rows = 9, L_out = 140
    x3 = jax.random.normal(k3, (N3, C3, L3), dtype=jnp.float32)
    y3 = jax.block_until_ready(chomp1d(x3, chomp3))
    y3_ref = x3[:, :, :-chomp3]
    assert y3.shape == (N3, C3, L3 - chomp3), y3.shape
    assert jnp.array_equal(y3, y3_ref), "mismatch vs reference slice (ragged rows)"

    print("KERNEL_OK")
</pallas_src>

<mosaic_0001>
module attributes {stable_mosaic.version = 11 : i64} {
  func.func @_chomp_copy_kernel(%arg0: i32, %arg1: i32, %arg2: memref<8x16xf32, #tpu.memory_space<vmem>>, %arg3: memref<8x13xf32, #tpu.memory_space<vmem>>) attributes {dimension_semantics = [#tpu.dimension_semantics<parallel>, #tpu.dimension_semantics<parallel>], iteration_bounds = array<i64: 1, 1>, scalar_prefetch = 0 : i64, scratch_operands = 0 : i64, tpu.core_type = #tpu.core_type<tc>, window_params = [{transform_indices = @transform_0, window_bounds = array<i64: 8, 16>}, {transform_indices = @transform_1, window_bounds = array<i64: 8, 13>}]} {
    %c0 = arith.constant 0 : index
    %c0_0 = arith.constant 0 : index
    %0 = vector.load %arg2[%c0, %c0_0] : memref<8x16xf32, #tpu.memory_space<vmem>>, vector<8x13xf32>
    %c0_1 = arith.constant 0 : index
    %c0_2 = arith.constant 0 : index
    %1 = vector.load %arg3[%c0_1, %c0_2] : memref<8x13xf32, #tpu.memory_space<vmem>>, vector<8x13xf32>
    tpu.vector_store %arg3[%c0_1, %c0_2], %0 {strides = array<i32>} : memref<8x13xf32, #tpu.memory_space<vmem>>, vector<8x13xf32>,
    return
  }
  func.func @transform_0(%arg0: i32, %arg1: i32) -> (i32, i32) {
    %c0_i32 = arith.constant 0 : i32
    %c0_i32_0 = arith.constant 0 : i32
    return %arg0, %c0_i32 : i32, i32
  }
  func.func @transform_1(%arg0: i32, %arg1: i32) -> (i32, i32) {
    %c0_i32 = arith.constant 0 : i32
    %c0_i32_0 = arith.constant 0 : i32
    return %arg0, %c0_i32 : i32, i32
  }
}

</mosaic_0001>

<bundles_post_ra>
// kernel: tpu_custom_call.1
= control target key start
LH: loop header
LB: loop body
LE: loop exit
PB: predicated region body
PF: predicated region fallthrough
CT: control target
= control target key end

     0   :  { %6 = vsyncpa [#allocation3], 0  ;;  %s103_s0 = inlined_call_operand.hbm [shape: f32[8,16], index: 0, kind: input, shape index: {}]   ;;  %s104_s1 = inlined_call_operand.hbm [shape: f32[8,13], index: 1, kind: output, shape index: {}]  }
   0x1   :  { %7 = vsyncpa [#allocation4], 0  ;;  %s85_s6 = smov [#allocation2]  }
   0x2   :  { %s14_s7 = sshll.u32 %s85_s6, 4  ;;  %s15_s7 = int_to_ptr.vmem [resolvable:$true] %s14_s7 }
   0x3   :  { %s49_s8 = scalar_lea.vmem %s15_s7, 128  ;;  %p54_p1 = scmp.lt.s32.totalorder %s15_s7, %s15_s7 }
   0x4   :  { %p50_p0 = scmp.ne.s32.totalorder %s15_s7, %s49_s8  ;;  %p55_p2 = scmp.lt.s32.totalorder %s49_s8, %s49_s8 }
   0x6   :  { %p56_p3 = por %p55_p2, %p54_p1 }
   0x8   :  { %p57_p4 = pnand %p56_p3, %p50_p0 }
   0xa   :  { %60 = shalt.err (!%p57_p4)
}
   0xb   :  { %17 = dma.hbm_to_vmem [thread:$0]  %s103_s0, 128, %s15_s7, [#allocation3]  }
   0xc   :  { %81 = dma.done.wait [#allocation3], 128  }
   0xd   :  { %82 = vsyncadd [#allocation3], 4294967168  ;;  %s86_s11 = smov [#allocation5]   ;;  %vm22_vm0 = vcmask 105472   ;;  %v21_v0 = vld [vmem:[#allocation2] sm:$0xff] }
   0xe   :  { %s30_s12 = sshll.u32 %s86_s11, 4  ;;  %23 = vst.msk [vmem:[#allocation5] sm:$0xff] %vm22_vm0, %v21_v0  ;;  %s31_s12 = int_to_ptr.vmem [resolvable:$true] %s30_s12 }
   0xf   :  { %s61_s13 = scalar_lea.vmem %s31_s12, 128  ;;  %p66_p6 = scmp.lt.s32.totalorder %s31_s12, %s31_s12 }
  0x10   :  { %p62_p5 = scmp.ne.s32.totalorder %s31_s12, %s61_s13  ;;  %p67_p7 = scmp.lt.s32.totalorder %s61_s13, %s61_s13 }
  0x12   :  { %p68_p8 = por %p67_p7, %p66_p6 }
  0x14   :  { %p69_p9 = pnand %p68_p8, %p62_p5 }
  0x16   :  { %72 = shalt.err (!%p69_p9)
}
  0x17   :  { %33 = dma.vmem_to_hbm [thread:$0]  %s31_s12, 128, %s104_s1, [#allocation4]  }
  0x18   :  { %83 = dma.done.wait [#allocation4], 128  }
  0x19   :  { %84 = vsyncadd [#allocation4], 4294967168 }
  0x1a   :  { %37 = vsyncpa [#allocation3], 1 }
  0x1b   :  { %38 = vsyncpa [#allocation4], 1 }

</bundles_post_ra>
